<compile_context>
chip_gen: v7x
topology: tpu7x:2x2x1
jax: 0.10.0
libtpu: 0.0.40
codegen_flags: <defaults>
</compile_context>

<pallas_src>
import functools

import jax
import jax.numpy as jnp
from jax.experimental import pallas as pl
from jax.experimental.pallas import tpu as pltpu


def _round_up(x, m):
    return ((x + m - 1) // m) * m


def _erf_poly(z):
    """Abramowitz & Stegun 7.1.26 erf approximation (|err| <= 1.5e-7).

    Uses only mul/add/div/exp/select (VPU + EUP) so exact-GELU parity with
    PyTorch does not depend on an erf lowering rule in Mosaic.
    """
    a1, a2, a3, a4, a5 = (0.254829592, -0.284496736, 1.421413741,
                          -1.453152027, 1.061405429)
    p = 0.3275911
    s = jnp.where(z >= 0.0, 1.0, -1.0)
    az = jnp.abs(z)
    t = 1.0 / (1.0 + p * az)
    poly = ((((a5 * t + a4) * t + a3) * t + a2) * t + a1) * t
    return s * (1.0 - poly * jnp.exp(-az * az))


def _regression_block_kernel(x_ref, w_ref, b_ref, o_ref, acc_ref, *,
                             seq_len, activation):
    """One (TB, TS, Fp) tile: accumulate seq-sum; finalize pool + linear + act."""
    j = pl.program_id(1)

    @pl.when(j == 0)
    def _():
        acc_ref[...] = jnp.zeros_like(acc_ref)

    # Partial sum over this tile's sequence positions (seq/feature padding is 0).
    # f32 widening is fused into the reduce: no whole-tile f32 temp in VMEM.
    acc_ref[...] += jnp.sum(x_ref[...], axis=1, dtype=jnp.float32)

    @pl.when(j == pl.num_programs(1) - 1)
    def _():
        pooled = acc_ref[...] * (1.0 / float(seq_len))            # (TB, Fp) true mean
        y = jnp.dot(pooled, w_ref[...],
                    preferred_element_type=jnp.float32)           # (TB, 1) on MXU
        y = y + b_ref[0]
        if activation == "GELU":
            # Exact (erf) GELU -> matches PyTorch nn.GELU() default.
            y = 0.5 * y * (1.0 + _erf_poly(y * 0.7071067811865476))
        elif activation == "ReLU":
            y = jnp.maximum(y, 0.0)
        elif activation == "LeakyReLU":
            y = jnp.where(y >= 0.0, y, 0.01 * y)
        else:                                    # Tanh (get_activation_func fallback)
            y = jnp.tanh(y)
        o_ref[...] = y.astype(o_ref.dtype)


@functools.partial(jax.jit,
                   static_argnames=("activation", "block_batch", "block_seq"))
def regression_block_forward(x, w, b, *, activation="GELU",
                             block_batch=None, block_seq=None):
    """x: (B, S, F); w: (F, 1); b: (1,). Returns activation(mean(x, 1) @ w + b)."""
    B, S, F = x.shape
    itemsize = x.dtype.itemsize
    # TODO(synk): Dropout is identity at inference; training-mode RNG masking
    # (pltpu.prng_seed / prng_random_bits) is intentionally not implemented.

    # ---- Generation-aware VMEM budget --------------------------------------
    try:
        vmem_cap = int(pltpu.get_tpu_info().vmem_capacity_bytes)
    except Exception:
        vmem_cap = 64 * 1024 * 1024            # conservative: v7x physical VMEM
    vmem_budget = (vmem_cap * 3) // 4           # ~25% headroom
    # Per-buffer x-tile byte target: large enough to sit near the HBM roofline,
    # small enough that double buffering + scratch fits on every generation.
    tile_target = min(16 * 1024 * 1024, max(vmem_budget // 3, 2 * 1024 * 1024))

    # ---- Tile sizes ---------------------------------------------------------
    Fp = _round_up(F, 128)                      # lane-dense feature axis

    if block_batch is None:
        tb = min(128, _round_up(B, 8))
    else:
        tb = max(8, (block_batch // 8) * 8)
    tb = min(tb, _round_up(B, 8))
    Bp = _round_up(B, tb)
    # Guarantee >= 2 batch tiles when possible so the "parallel" axis can shard
    # across both v7x TensorCores.
    while Bp // tb < 2 and tb > 8:
        tb = max(8, _round_up(tb // 2, 8))
        Bp = _round_up(B, tb)

    ts_max = _round_up(S, 8)
    if block_seq is None:
        row_bytes = tb * Fp * itemsize
        ts = max(8, (tile_target // row_bytes) // 8 * 8)
        ts = min(ts, ts_max)
    else:
        ts = min(max(8, (block_seq // 8) * 8), ts_max)
    Sp = _round_up(S, ts)

    if (Bp, Sp, Fp) != (B, S, F):
        x = jnp.pad(x, ((0, Bp - B), (0, Sp - S), (0, Fp - F)))

    w2 = jnp.pad(w.reshape(F, 1).astype(jnp.float32), ((0, Fp - F), (0, 0)))
    b1 = b.reshape(1).astype(jnp.float32)

    grid = (Bp // tb, Sp // ts)
    tile_bytes = tb * ts * Fp * itemsize

    # Deeper pipelining only when tiles are tiny and there is work to overlap.
    if tile_bytes < 2 * 1024 * 1024 and grid[1] >= 3:
        n_x_buf = 3
        x_spec = pl.BlockSpec((tb, ts, Fp), lambda i, j: (i, j, 0),
                              pipeline_mode=pl.Buffered(3))
    else:
        n_x_buf = 2
        x_spec = pl.BlockSpec((tb, ts, Fp), lambda i, j: (i, j, 0))

    # Explicit VMEM limit: buffered x tiles dominate; 25% slack, clamped to budget.
    need = (n_x_buf * tile_bytes            # x tiles
            + tb * Fp * 4                   # f32 accumulator scratch
            + 2 * Fp * 4                    # weight (double buffered)
            + 2 * tb * itemsize)            # output tile
    vmem_limit = int(min(vmem_budget, max((need * 5) // 4, 4 * 1024 * 1024)))

    cost = pl.CostEstimate(
        flops=Bp * Sp * Fp + 2 * Bp * Fp,
        transcendentals=Bp,
        bytes_accessed=Bp * Sp * Fp * itemsize + Fp * 4 + 4 + Bp * itemsize,
    )

    kernel = functools.partial(_regression_block_kernel,
                               seq_len=S, activation=activation)

    out = pl.pallas_call(
        kernel,
        out_shape=jax.ShapeDtypeStruct((Bp, 1), x.dtype),
        grid_spec=pltpu.PrefetchScalarGridSpec(
            num_scalar_prefetch=0,
            grid=grid,
            in_specs=[
                x_spec,                                                   # x tile
                pl.BlockSpec((Fp, 1), lambda i, j: (0, 0)),               # weight
                pl.BlockSpec(memory_space=pltpu.MemorySpace.SMEM),        # bias scalar
            ],
            out_specs=pl.BlockSpec((tb, 1), lambda i, j: (i, 0)),
            scratch_shapes=[pltpu.VMEM((tb, Fp), jnp.float32)],
        ),
        compiler_params=pltpu.CompilerParams(
            dimension_semantics=("parallel", "arbitrary"),
            vmem_limit_bytes=vmem_limit),
        cost_estimate=cost,
    )(x, w2, b1)
    return out[:B]


if __name__ == "__main__":
    # Small shapes consistent with the module: (batch, seq, out_feature2).
    B, S, F = 4, 8, 128

    key = jax.random.PRNGKey(0)
    kx, kw, kb = jax.random.split(key, 3)
    x = jax.random.normal(kx, (B, S, F), dtype=jnp.float32)
    # Linear(in_features=F, out_features=1): weight stored as (F, 1), bias (1,).
    w = jax.random.normal(kw, (F, 1), dtype=jnp.float32) * 0.05
    b = jax.random.normal(kb, (1,), dtype=jnp.float32) * 0.05

    out = regression_block_forward(x, w, b, activation="GELU")
    out = jax.block_until_ready(out)

    # Pure-JAX reference of RegressionBlock.forward (eval mode: dropout = id).
    # PyTorch nn.GELU() default is the exact erf form.
    pooled = jnp.mean(x, axis=1)
    ref = jax.nn.gelu(
        jnp.dot(pooled, w, precision=jax.lax.Precision.HIGHEST) + b.reshape(1, 1),
        approximate=False)
    assert out.shape == (B, 1) and out.dtype == x.dtype
    assert jnp.allclose(out, ref, atol=1e-5, rtol=1e-5), "mismatch vs reference"

    print("KERNEL_OK")
</pallas_src>

<mosaic_0001>
module attributes {stable_mosaic.version = 11 : i64} {
  func.func @_regression_block_kernel(%arg0: i32, %arg1: i32, %arg2: memref<8x8x128xf32, #tpu.memory_space<vmem>>, %arg3: memref<128x1xf32, #tpu.memory_space<vmem>>, %arg4: memref<1xf32, #tpu.memory_space<smem>>, %arg5: memref<8x1xf32, #tpu.memory_space<vmem>>, %arg6: memref<8x128xf32, #tpu.memory_space<vmem>>) attributes {dimension_semantics = [#tpu.dimension_semantics<parallel>, #tpu.dimension_semantics<arbitrary>], iteration_bounds = array<i64: 1, 1>, scalar_prefetch = 0 : i64, scratch_operands = 1 : i64, tpu.core_type = #tpu.core_type<tc>, window_params = [{transform_indices = @transform_0, window_bounds = array<i64: 8, 8, 128>}, {pipeline_mode = #tpu.pipeline_mode<synchronous>, transform_indices = @transform_1, window_bounds = array<i64: 128, 1>}, {transform_indices = @transform_2, window_bounds = array<i64: 1>}, {transform_indices = @transform_3, window_bounds = array<i64: 8, 1>}]} {
    %c0_i32 = arith.constant 0 : i32
    %0 = arith.cmpi eq, %arg1, %c0_i32 : i32
    %1 = arith.extui %0 : i1 to i32
    %c0_i32_0 = arith.constant 0 : i32
    %2 = arith.cmpi ne, %1, %c0_i32_0 : i32
    scf.if %2 {
      %cst_9 = arith.constant 0.000000e+00 : f32
      %11 = vector.broadcast %cst_9 : f32 to vector<8x128xf32>
      %c0_10 = arith.constant 0 : index
      %c0_11 = arith.constant 0 : index
      %12 = vector.load %arg6[%c0_10, %c0_11] : memref<8x128xf32, #tpu.memory_space<vmem>>, vector<8x128xf32>
      tpu.vector_store %arg6[%c0_10, %c0_11], %11 {strides = array<i32>} : memref<8x128xf32, #tpu.memory_space<vmem>>, vector<8x128xf32>,
    } else {
    }
    %c0 = arith.constant 0 : index
    %c0_1 = arith.constant 0 : index
    %3 = vector.load %arg6[%c0, %c0_1] : memref<8x128xf32, #tpu.memory_space<vmem>>, vector<8x128xf32>
    %c0_2 = arith.constant 0 : index
    %c0_3 = arith.constant 0 : index
    %c0_4 = arith.constant 0 : index
    %4 = vector.load %arg2[%c0_2, %c0_3, %c0_4] : memref<8x8x128xf32, #tpu.memory_space<vmem>>, vector<8x8x128xf32>
    %cst = arith.constant dense<0.000000e+00> : vector<8x128xf32>
    %5 = vector.multi_reduction <add>, %4, %cst [1] : vector<8x8x128xf32> to vector<8x128xf32>
    %6 = arith.addf %3, %5 : vector<8x128xf32>
    %c0_5 = arith.constant 0 : index
    %c0_6 = arith.constant 0 : index
    %7 = vector.load %arg6[%c0_5, %c0_6] : memref<8x128xf32, #tpu.memory_space<vmem>>, vector<8x128xf32>
    tpu.vector_store %arg6[%c0_5, %c0_6], %6 {strides = array<i32>} : memref<8x128xf32, #tpu.memory_space<vmem>>, vector<8x128xf32>,
    %c0_i32_7 = arith.constant 0 : i32
    %8 = arith.cmpi eq, %arg1, %c0_i32_7 : i32
    %9 = arith.extui %8 : i1 to i32
    %c0_i32_8 = arith.constant 0 : i32
    %10 = arith.cmpi ne, %9, %c0_i32_8 : i32
    scf.if %10 {
      %c0_9 = arith.constant 0 : index
      %c0_10 = arith.constant 0 : index
      %11 = vector.load %arg6[%c0_9, %c0_10] : memref<8x128xf32, #tpu.memory_space<vmem>>, vector<8x128xf32>
      %cst_11 = arith.constant 1.250000e-01 : f32
      %12 = vector.broadcast %cst_11 : f32 to vector<8x128xf32>
      %13 = arith.mulf %11, %12 : vector<8x128xf32>
      %c0_12 = arith.constant 0 : index
      %c0_13 = arith.constant 0 : index
      %14 = vector.load %arg3[%c0_12, %c0_13] : memref<128x1xf32, #tpu.memory_space<vmem>>, vector<128x1xf32>
      %cst_14 = arith.constant dense<0.000000e+00> : vector<8x1xf32>
      %15 = tpu.matmul %13, %14, %cst_14 {dimension_numbers = #tpu.dot_dimension_numbers<[1], [0], [0], [1], [0, 0, 1, 1], [], []>} : vector<8x128xf32>, vector<128x1xf32>, vector<8x1xf32> -> vector<8x1xf32>
      %c0_15 = arith.constant 0 : index
      %16 = memref.load %arg4[%c0_15] : memref<1xf32, #tpu.memory_space<smem>>
      %17 = vector.broadcast %16 : f32 to vector<8x1xf32>
      %18 = arith.addf %15, %17 : vector<8x1xf32>
      %cst_16 = arith.constant 5.000000e-01 : f32
      %19 = vector.broadcast %cst_16 : f32 to vector<8x1xf32>
      %20 = arith.mulf %19, %18 : vector<8x1xf32>
      %cst_17 = arith.constant 0.707106769 : f32
      %21 = vector.broadcast %cst_17 : f32 to vector<8x1xf32>
      %22 = arith.mulf %18, %21 : vector<8x1xf32>
      %cst_18 = arith.constant 0.000000e+00 : f32
      %23 = vector.broadcast %cst_18 : f32 to vector<8x1xf32>
      %24 = arith.cmpf oge, %22, %23 : vector<8x1xf32>
      %cst_19 = arith.constant 1.000000e+00 : f32
      %cst_20 = arith.constant -1.000000e+00 : f32
      %25 = vector.broadcast %cst_19 : f32 to vector<8x1xf32>
      %26 = vector.broadcast %cst_20 : f32 to vector<8x1xf32>
      %27 = arith.select %24, %25, %26 : vector<8x1xi1>, vector<8x1xf32>
      %28 = math.absf %22 : vector<8x1xf32>
      %cst_21 = arith.constant 0.327591091 : f32
      %29 = vector.broadcast %cst_21 : f32 to vector<8x1xf32>
      %30 = arith.mulf %29, %28 : vector<8x1xf32>
      %cst_22 = arith.constant 1.000000e+00 : f32
      %31 = vector.broadcast %cst_22 : f32 to vector<8x1xf32>
      %32 = arith.addf %31, %30 : vector<8x1xf32>
      %cst_23 = arith.constant 1.000000e+00 : f32
      %33 = vector.broadcast %cst_23 : f32 to vector<8x1xf32>
      %34 = arith.divf %33, %32 : vector<8x1xf32>
      %cst_24 = arith.constant 1.06140542 : f32
      %35 = vector.broadcast %cst_24 : f32 to vector<8x1xf32>
      %36 = arith.mulf %35, %34 : vector<8x1xf32>
      %cst_25 = arith.constant -1.45315206 : f32
      %37 = vector.broadcast %cst_25 : f32 to vector<8x1xf32>
      %38 = arith.addf %36, %37 : vector<8x1xf32>
      %39 = arith.mulf %38, %34 : vector<8x1xf32>
      %cst_26 = arith.constant 1.42141378 : f32
      %40 = vector.broadcast %cst_26 : f32 to vector<8x1xf32>
      %41 = arith.addf %39, %40 : vector<8x1xf32>
      %42 = arith.mulf %41, %34 : vector<8x1xf32>
      %cst_27 = arith.constant -0.284496725 : f32
      %43 = vector.broadcast %cst_27 : f32 to vector<8x1xf32>
      %44 = arith.addf %42, %43 : vector<8x1xf32>
      %45 = arith.mulf %44, %34 : vector<8x1xf32>
      %cst_28 = arith.constant 0.254829586 : f32
      %46 = vector.broadcast %cst_28 : f32 to vector<8x1xf32>
      %47 = arith.addf %45, %46 : vector<8x1xf32>
      %48 = arith.mulf %47, %34 : vector<8x1xf32>
      %cst_29 = arith.constant 0.000000e+00 : f32
      %49 = vector.broadcast %cst_29 : f32 to vector<8x1xf32>
      %50 = arith.subf %49, %28 : vector<8x1xf32>
      %51 = arith.mulf %50, %28 : vector<8x1xf32>
      %52 = math.exp %51 : vector<8x1xf32>
      %53 = arith.mulf %48, %52 : vector<8x1xf32>
      %cst_30 = arith.constant 1.000000e+00 : f32
      %54 = vector.broadcast %cst_30 : f32 to vector<8x1xf32>
      %55 = arith.subf %54, %53 : vector<8x1xf32>
      %56 = arith.mulf %27, %55 : vector<8x1xf32>
      %cst_31 = arith.constant 1.000000e+00 : f32
      %57 = vector.broadcast %cst_31 : f32 to vector<8x1xf32>
      %58 = arith.addf %57, %56 : vector<8x1xf32>
      %59 = arith.mulf %20, %58 : vector<8x1xf32>
      %c0_32 = arith.constant 0 : index
      %c0_33 = arith.constant 0 : index
      %60 = vector.load %arg5[%c0_32, %c0_33] : memref<8x1xf32, #tpu.memory_space<vmem>>, vector<8x1xf32>
      tpu.vector_store %arg5[%c0_32, %c0_33], %59 {strides = array<i32>} : memref<8x1xf32, #tpu.memory_space<vmem>>, vector<8x1xf32>,
    } else {
    }
    return
  }
  func.func @transform_0(%arg0: i32, %arg1: i32) -> (i32, i32, i32) {
    %c0_i32 = arith.constant 0 : i32
    %c0_i32_0 = arith.constant 0 : i32
    return %arg0, %arg1, %c0_i32 : i32, i32, i32
  }
  func.func @transform_1(%arg0: i32, %arg1: i32) -> (i32, i32) {
    %c0_i32 = arith.constant 0 : i32
    %c0_i32_0 = arith.constant 0 : i32
    %c0_i32_1 = arith.constant 0 : i32
    return %c0_i32, %c0_i32_0 : i32, i32
  }
  func.func @transform_2(%arg0: i32, %arg1: i32) -> i32 {
    %c0_i32 = arith.constant 0 : i32
    %c0_i32_0 = arith.constant 0 : i32
    return %c0_i32 : i32
  }
  func.func @transform_3(%arg0: i32, %arg1: i32) -> (i32, i32) {
    %c0_i32 = arith.constant 0 : i32
    %c0_i32_0 = arith.constant 0 : i32
    return %arg0, %c0_i32 : i32, i32
  }
}

</mosaic_0001>

<bundles_post_ra>
// kernel: regression_block_forward.1
= control target key start
LH: loop header
LB: loop body
LE: loop exit
PB: predicated region body
PF: predicated region fallthrough
CT: control target
= control target key end

     0   :  { %v312_v0 = vmov 0.0|0.0   ;;  %vm313_vm0 = vmmov 0   ;;  %v314_v4 = vmov 0.0   ;;  %vm85_vm1 = vcmask 1041409   ;;  %s430_s1 = inlined_call_operand.vmem [shape: f32[128,1], index: 1, kind: input, shape index: {}]   ;;  %s431_s0 = inlined_call_operand.vmem [shape: f32[8,8,128], index: 0, kind: input, shape index: {}]   ;;  %s432_s2 = inlined_call_operand.<no memory space> [shape: f32[1], index: 2, kind: input, shape index: {}]   ;;  %s433_s3 = inlined_call_operand.vmem [shape: f32[8,1], index: 3, kind: output, shape index: {}]  }
   0x1   :  { %280 = vmatprep.subr.bf16.mxu0 %v312_v0  ;;  %v107_v1 = vld [vmem:[%s430_s1] sm:$0xff]  ;;  %v108_v2 = vld [vmem:[%s430_s1 + $0x8] sm:$0xff]  ;;  %v109_v3 = vld [vmem:[%s430_s1 + $0x10] sm:$0xff]  ;;  %277 = vmatprep.mubr.msk.f32.mxu0 %vm313_vm0, %v314_v4  ;;  %vm87_vm2 = vcmask 1042434   ;;  %vm89_vm3 = vcmask 1043459   ;;  %vm91_vm4 = vcmask 1044484  }
   0x2   :  { %v281_v5 = vpack.c.bf16 %v108_v2, %v107_v1  ;;  %v110_v6 = vld [vmem:[%s430_s1 + $0x18] sm:$0xff]  ;;  %v111_v7 = vld [vmem:[%s430_s1 + $0x20] sm:$0xff]  ;;  %v112_v9 = vld [vmem:[%s430_s1 + $0x28] sm:$0xff]  ;;  %vm93_vm5 = vcmask 1045509   ;;  %vm95_vm6 = vcmask 1046534   ;;  %vm97_vm7 = vcmask 1047559  }
   0x3   :  { %v284_v8 = vpack.c.bf16 %v110_v6, %v109_v3  ;;  %v113_v10 = vld [vmem:[%s430_s1 + $0x30] sm:$0xff]  ;;  %v114_v11 = vld [vmem:[%s430_s1 + $0x38] sm:$0xff]  ;;  %v365_v12 = vld [vmem:[%s430_s1 + $0x40] sm:$0xff]  ;;  %v287_v16 = vpack.c.bf16 %v112_v9, %v111_v7  ;;  %vm222_vm9 = vcmask 7168  }
   0x4   :  { %282 = vmatpush3.bf16.msra.mxu0 %v281_v5  ;;  %v370_v13 = vld [vmem:[%s430_s1 + $0x48] sm:$0xff]  ;;  %v21_v14 = vld [vmem:[%s431_s0] sm:$0xff]  ;;  %v290_v17 = vpack.c.bf16 %v114_v11, %v113_v10  ;;  %v23_v18 = vld [vmem:[%s431_s0 + $0x10] sm:$0xff] }
   0x5   :  { %283 = vmatprep.subr.bf16.mxu0 %v312_v0  ;;  %v22_v15 = vld [vmem:[%s431_s0 + $0x8] sm:$0xff]  ;;  %v24_v19 = vld [vmem:[%s431_s0 + $0x18] sm:$0xff]  ;;  %v25_v20 = vld [vmem:[%s431_s0 + $0x20] sm:$0xff]  ;;  %v29_v21 = vrot.slane %v21_v14, 4  ;;  %v293_v23 = vpack.c.bf16 %v370_v13, %v365_v12  ;;  %v41_v27 = vrot.slane %v23_v18, 4 }
   0x6   :  { %v35_v22 = vrot.slane %v22_v15, 4  ;;  %v26_v24 = vld [vmem:[%s431_s0 + $0x28] sm:$0xff]  ;;  %v27_v25 = vld [vmem:[%s431_s0 + $0x30] sm:$0xff]  ;;  %v28_v26 = vld [vmem:[%s431_s0 + $0x38] sm:$0xff]  ;;  %v47_v28 = vrot.slane %v24_v19, 4  ;;  %v53_v29 = vrot.slane %v25_v20, 4 }
   0x7   :  { %v30_v30 = vadd.f32 %v29_v21, %v21_v14  ;;  %v59_v32 = vrot.slane %v26_v24, 4  ;;  %v65_v33 = vrot.slane %v27_v25, 4  ;;  %v42_v34 = vadd.f32 %v41_v27, %v23_v18  ;;  %v117_v62 = vld [vmem:[%s430_s1 + $0x50] sm:$0xff]  ;;  %v118_v63 = vld [vmem:[%s430_s1 + $0x58] sm:$0xff]  ;;  %v119_v13 = vld [vmem:[%s430_s1 + $0x60] sm:$0xff] }
   0x8   :  { %285 = vmatpush3.bf16.msra.mxu0 %v284_v8  ;;  %v36_v31 = vadd.f32 %v35_v22, %v22_v15  ;;  %v48_v35 = vadd.f32 %v47_v28, %v24_v19  ;;  %v54_v36 = vadd.f32 %v53_v29, %v25_v20  ;;  %v71_v37 = vrot.slane %v28_v26, 4  ;;  %v120_v14 = vld [vmem:[%s430_s1 + $0x68] sm:$0xff]  ;;  %v121_v21 = vld [vmem:[%s430_s1 + $0x70] sm:$0xff]  ;;  %v122_v22 = vld [vmem:[%s430_s1 + $0x78] sm:$0xff] }
   0x9   :  { %286 = vmatprep.subr.bf16.mxu0 %v312_v0  ;;  %v31_v38 = vrot.slane %v30_v30, 2  ;;  %v60_v40 = vadd.f32 %v59_v32, %v26_v24  ;;  %v66_v41 = vadd.f32 %v65_v33, %v27_v25  ;;  %v43_v42 = vrot.slane %v42_v34, 2 }
   0xa   :  { %v37_v39 = vrot.slane %v36_v31, 2  ;;  %v49_v43 = vrot.slane %v48_v35, 2  ;;  %v55_v44 = vrot.slane %v54_v36, 2  ;;  %v72_v45 = vadd.f32 %v71_v37, %v28_v26 }
   0xb   :  { %v32_v46 = vadd.f32 %v31_v38, %v30_v30  ;;  %v61_v48 = vrot.slane %v60_v40, 2  ;;  %v67_v49 = vrot.slane %v66_v41, 2  ;;  %v44_v50 = vadd.f32 %v43_v42, %v42_v34 }
   0xc   :  { %288 = vmatpush3.bf16.msra.mxu0 %v287_v16  ;;  %v38_v47 = vadd.f32 %v37_v39, %v36_v31  ;;  %v50_v51 = vadd.f32 %v49_v43, %v48_v35  ;;  %v56_v52 = vadd.f32 %v55_v44, %v54_v36  ;;  %v73_v53 = vrot.slane %v72_v45, 2 }
   0xd   :  { %289 = vmatprep.subr.bf16.mxu0 %v312_v0  ;;  %v33_v54 = vrot.slane %v32_v46, 1  ;;  %v62_v56 = vadd.f32 %v61_v48, %v60_v40  ;;  %v68_v57 = vadd.f32 %v67_v49, %v66_v41  ;;  %v45_v58 = vrot.slane %v44_v50, 1 }
   0xe   :  { %v39_v55 = vrot.slane %v38_v47, 1  ;;  %v51_v59 = vrot.slane %v50_v51, 1  ;;  %v57_v60 = vrot.slane %v56_v52, 1  ;;  %v74_v61 = vadd.f32 %v73_v53, %v72_v45 }
   0xf   :  { %v34_v1 = vadd.f32 %v33_v54, %v32_v46  ;;  %v63_v3 = vrot.slane %v62_v56, 1  ;;  %v69_v4 = vrot.slane %v68_v57, 1  ;;  %v46_v5 = vadd.f32 %v45_v58, %v44_v50 }
  0x10   :  { %291 = vmatpush3.bf16.msra.mxu0 %v290_v17  ;;  %v40_v2 = vadd.f32 %v39_v55, %v38_v47  ;;  %v52_v6 = vadd.f32 %v51_v59, %v50_v51  ;;  %v58_v7 = vadd.f32 %v57_v60, %v56_v52  ;;  %v296_v10 = vpack.c.bf16 %v118_v63, %v117_v62 }
  0x11   :  { %292 = vmatprep.subr.bf16.mxu0 %v312_v0  ;;  %v64_v8 = vadd.f32 %v63_v3, %v62_v56  ;;  %v75_v11 = vrot.slane %v74_v61, 1  ;;  %v70_v15 = vadd.f32 %v69_v4, %v68_v57  ;;  %v299_v19 = vpack.c.bf16 %v120_v14, %v119_v13 }
  0x12   :  { %v86_v9 = vsel %vm85_vm1, %v40_v2, %v34_v1  ;;  %v302_v24 = vpack.c.bf16 %v122_v22, %v121_v21  ;;  %v124_v27 = vstv %s432_s2  ;;  %v315_v50 = vmov -1.0  }
  0x13   :  { %v88_v12 = vsel %vm87_vm2, %v46_v5, %v86_v9  ;;  %v76_v20 = vadd.f32 %v75_v11, %v74_v61 }
  0x14   :  { %294 = vmatpush3.bf16.msra.mxu0 %v293_v23  ;;  %v90_v16 = vsel %vm89_vm3, %v52_v6, %v88_v12 }
  0x15   :  { %295 = vmatprep.subr.bf16.mxu0 %v312_v0  ;;  %v92_v17 = vsel %vm91_vm4, %v58_v7, %v90_v16 }
  0x16   :  { %v94_v18 = vsel %vm93_vm5, %v64_v8, %v92_v17 }
  0x17   :  { %v96_v23 = vsel %vm95_vm6, %v70_v15, %v94_v18 }
  0x18   :  { %297 = vmatpush3.bf16.msra.mxu0 %v296_v10  ;;  %v98_v25 = vsel %vm97_vm7, %v76_v20, %v96_v23 }
  0x19   :  { %298 = vmatprep.subr.bf16.mxu0 %v312_v0  ;;  %v106_v26 = vmul.f32 0.125, %v98_v25 }
  0x1c   :  { %300 = vmatpush3.bf16.msra.mxu0 %v299_v19 }
  0x1d   :  { %301 = vmatprep.subr.bf16.mxu0 %v312_v0 }
  0x20   :  { %303 = vmatpush3.bf16.msra.mxu0 %v302_v24 }
  0x23   :  { %278 = vmatmul.mubr.f32.vlgmr.msra.gmra.mrb[0].mxu0 %v106_v26 }
  0xf6   :  { %v191_v28 = vpop.f32.mrb[0].mxu0 }
  0xf7   :  { %v192_v29 = vadd.f32 %v191_v28, %v124_v27  ;;  %v279_v30 = vpop.f32.mrb[1].mxu0 }
  0xf9   :  { %v196_v31 = vmul.f32 0.70710677, %v192_v29  ;;  %v195_v53 = vmul.f32 0.5, %v192_v29 }
  0xfb   :  { %v199_v32 = vand.u32 2147483647, %v196_v31  ;;  %vm197_vm8 = vcmp.ge.f32.partialorder %v196_v31, 0.0 }
  0xfc   :  { %v198_v51 = vsel %vm197_vm8, 1.0, %v315_v50 }
  0xfd   :  { %v200_v33 = vmul.f32 0.3275911, %v199_v32  ;;  %v213_v35 = vsub.f32 0.0, %v199_v32 }
  0xff   :  { %v201_v34 = vadd.f32 1.0, %v200_v33  ;;  %v214_v37 = vmul.f32 %v213_v35, %v199_v32 }
 0x101   :  { %308 = vrcp.f32 %v201_v34  ;;  %v215_v39 = vmul.f32 1.442695, %v214_v37 }
 0x103   :  { %310 = vpow2.f32 %v215_v39 }
 0x10b   :  { %v309_v36 = vpop.eup %308 }
 0x10c   :  { %v204_v38 = vmul.f32 1.0614054, %v309_v36 }
 0x10d   :  { %v311_v47 = vpop.eup %310 }
 0x10e   :  { %v205_v0 = vadd.f32 -1.4531521, %v204_v38 }
 0x110   :  { %v206_v40 = vmul.f32 %v309_v36, %v205_v0 }
 0x112   :  { %v207_v41 = vadd.f32 1.4214138, %v206_v40 }
 0x114   :  { %v208_v42 = vmul.f32 %v309_v36, %v207_v41 }
 0x116   :  { %v209_v43 = vadd.f32 -0.28449672, %v208_v42 }
 0x118   :  { %v210_v44 = vmul.f32 %v309_v36, %v209_v43 }
 0x11a   :  { %v211_v45 = vadd.f32 0.2548296, %v210_v44 }
 0x11c   :  { %v212_v46 = vmul.f32 %v309_v36, %v211_v45 }
 0x11e   :  { %v217_v48 = vmul.f32 %v311_v47, %v212_v46 }
 0x120   :  { %v218_v49 = vsub.f32 1.0, %v217_v48 }
 0x122   :  { %v219_v52 = vmul.f32 %v218_v49, %v198_v51 }
 0x124   :  { %v220_v54 = vadd.f32 1.0, %v219_v52 }
 0x126   :  { %v221_v55 = vmul.f32 %v220_v54, %v195_v53 }
 0x128   :  { %223 = vst.msk [vmem:[%s433_s3] sm:$0xff] %vm222_vm9, %v221_v55 }

</bundles_post_ra>
